<compile_context>
chip_gen: v7x
topology: tpu7x:2x2x1
jax: 0.10.0
libtpu: 0.0.40
codegen_flags: <defaults>
</compile_context>

<pallas_src>
import jax
import jax.numpy as jnp
from jax import lax
from jax.experimental import pallas as pl
from jax.experimental.pallas import tpu as pltpu

_LANES = 384                      # 3 * 128 -> channel == lane % 3
_MAX_TILE_ROWS = 2048             # (2048, 384) f32 block = 3 MiB per buffer
_VMEM_LIMIT_BYTES = 32 * 1024 * 1024
_JNP_FASTPATH_FLAT = 6144         # below this, fused XLA elementwise wins


def _round_up(x: int, m: int) -> int:
    return ((x + m - 1) // m) * m


def calculate_kernel(x_ref, o_ref):
    """Elementwise over a (tile_rows, 384) tile.

    Channel of each element = lane index % 3:
      channel 0 -> x*x, channel 1 -> exp(x), channel 2 -> sin(x).
    The channel masks are built on a single (1, 384) row (static per lane) and
    broadcast over the tile by the selects.
    """
    x = x_ref[...]
    ch = lax.broadcasted_iota(jnp.int32, (1, x.shape[-1]), 1) % 3
    is_sq = ch == 0
    is_exp = ch == 1
    o_ref[...] = jnp.where(is_sq, x * x,
                           jnp.where(is_exp, jnp.exp(x), jnp.sin(x)))


def _jnp_reference(x: jax.Array) -> jax.Array:
    return jnp.stack(
        [x[:, 0] * x[:, 0], jnp.exp(x[:, 1]), jnp.sin(x[:, 2])], axis=1
    )


def _run_slab(slab: jax.Array) -> jax.Array:
    """Run the kernel over an (m, 384) lane-dense slab (no extra copies)."""
    m = slab.shape[0]
    if m <= 8:
        tile_rows = m  # full-array block (allowed even if m % 8 != 0)
    else:
        # Aim for >= 2 grid steps (v7x megacore) before maxing the tile size;
        # Pallas masks the partial last block if tile_rows does not divide m.
        tile_rows = min(_MAX_TILE_ROWS, _round_up(pl.cdiv(m, 2), 8))

    elems = m * _LANES
    return pl.pallas_call(
        calculate_kernel,
        out_shape=jax.ShapeDtypeStruct((m, _LANES), jnp.float32),
        grid=(pl.cdiv(m, tile_rows),),
        in_specs=[pl.BlockSpec((tile_rows, _LANES), lambda i: (i, 0))],
        out_specs=pl.BlockSpec((tile_rows, _LANES), lambda i: (i, 0)),
        compiler_params=pltpu.CompilerParams(
            dimension_semantics=("parallel",),
            vmem_limit_bytes=_VMEM_LIMIT_BYTES,
        ),
        cost_estimate=pl.CostEstimate(
            flops=3 * elems,
            transcendentals=2 * elems,
            bytes_accessed=2 * elems * 4,
        ),
    )(slab)


def template_forward(obj_pc: jax.Array, *, force_pallas: bool = False) -> jax.Array:
    """Forward of the `Template` module: (N, 3) float32 -> (N, 3) float32."""
    assert obj_pc.ndim == 2 and obj_pc.shape[1] == 3, "expected (N, 3) point cloud"
    x = obj_pc.astype(jnp.float32)
    n = x.shape[0]
    n_flat = n * 3

    # Tiny workloads: fixed pallas_call/DMA overhead dominates -> plain XLA.
    if not force_pallas and n_flat < _JNP_FASTPATH_FLAT:
        return _jnp_reference(x)

    if n % 128 == 0:
        # Zero-copy path: (N, 3) row-major == (N/128, 384); reshapes are free.
        return _run_slab(x.reshape(n // 128, _LANES)).reshape(n, 3)

    n_main = (n // 128) * 128
    if n_main == 0:
        # Tiny, unaligned (reached only with force_pallas): pad the flat vector
        # up to one 384-wide row.  Zeros are finite under x*x / exp / sin and
        # the padded tail is sliced away.
        flat = x.reshape(-1)
        padded = _round_up(n_flat, _LANES)
        flat = jnp.pad(flat, (0, padded - n_flat))
        out = _run_slab(flat.reshape(padded // _LANES, _LANES))
        return out.reshape(-1)[:n_flat].reshape(n, 3)

    # Unaligned: kernel on the 128-point-aligned prefix, plain XLA on the
    # (< 128 point) tail.  Avoids padding/slicing the full array.
    main = _run_slab(x[:n_main].reshape(n_main // 128, _LANES)).reshape(n_main, 3)
    tail = _jnp_reference(x[n_main:])
    return jnp.concatenate([main, tail], axis=0)


if __name__ == "__main__":
    key = jax.random.PRNGKey(0)
    k1, k2, k3 = jax.random.split(key, 3)

    # Module default size (N=100) — tiny unaligned Pallas path (padded slab).
    obj_pc_small = jax.random.normal(k1, (100, 3), dtype=jnp.float32)
    out_small = jax.block_until_ready(
        template_forward(obj_pc_small, force_pallas=True)
    )
    ref_small = _jnp_reference(obj_pc_small)
    assert out_small.shape == obj_pc_small.shape and out_small.dtype == jnp.float32
    assert jnp.allclose(out_small, ref_small, atol=1e-5, rtol=1e-5)

    # 128-aligned point cloud — zero-copy path, multi-step grid.
    obj_pc_big = jax.random.normal(k2, (4096, 3), dtype=jnp.float32)
    out_big = jax.block_until_ready(
        template_forward(obj_pc_big, force_pallas=True)
    )
    ref_big = _jnp_reference(obj_pc_big)
    assert out_big.shape == obj_pc_big.shape and out_big.dtype == jnp.float32
    assert jnp.allclose(out_big, ref_big, atol=1e-5, rtol=1e-5)

    # Unaligned medium point cloud — kernel prefix + XLA tail path.
    obj_pc_mid = jax.random.normal(k3, (300, 3), dtype=jnp.float32)
    out_mid = jax.block_until_ready(
        template_forward(obj_pc_mid, force_pallas=True)
    )
    ref_mid = _jnp_reference(obj_pc_mid)
    assert out_mid.shape == obj_pc_mid.shape and out_mid.dtype == jnp.float32
    assert jnp.allclose(out_mid, ref_mid, atol=1e-5, rtol=1e-5)

    # Fast-path (pure JAX) sanity check at the default size.
    out_fast = jax.block_until_ready(template_forward(obj_pc_small))
    assert jnp.allclose(out_fast, ref_small, atol=1e-5, rtol=1e-5)

    print("KERNEL_OK")
</pallas_src>

<mosaic_0001>
module attributes {stable_mosaic.version = 11 : i64} {
  func.func @calculate_kernel(%arg0: i32, %arg1: memref<1x384xf32, #tpu.memory_space<vmem>>, %arg2: memref<1x384xf32, #tpu.memory_space<vmem>>) attributes {dimension_semantics = [#tpu.dimension_semantics<parallel>], iteration_bounds = array<i64: 1>, scalar_prefetch = 0 : i64, scratch_operands = 0 : i64, tpu.core_type = #tpu.core_type<tc>, window_params = [{transform_indices = @transform_0, window_bounds = array<i64: 1, 384>}, {transform_indices = @transform_1, window_bounds = array<i64: 1, 384>}]} {
    %c0 = arith.constant 0 : index
    %c0_0 = arith.constant 0 : index
    %0 = vector.load %arg1[%c0, %c0_0] : memref<1x384xf32, #tpu.memory_space<vmem>>, vector<1x384xf32>
    %1 = tpu.iota {dimensions = array<i32: 1>} : vector<1x384xi32>
    %c3_i32 = arith.constant 3 : i32
    %c0_i32 = arith.constant 0 : i32
    %2 = arith.cmpi eq, %c3_i32, %c0_i32 : i32
    %c1_i32 = arith.constant 1 : i32
    %3 = arith.select %2, %c1_i32, %c3_i32 : i32
    %4 = vector.broadcast %3 : i32 to vector<1x384xi32>
    %5 = arith.remsi %1, %4 : vector<1x384xi32>
    %c0_i32_1 = arith.constant 0 : i32
    %6 = vector.broadcast %c0_i32_1 : i32 to vector<1x384xi32>
    %7 = arith.cmpi ne, %5, %6 : vector<1x384xi32>
    %c0_i32_2 = arith.constant 0 : i32
    %8 = vector.broadcast %c0_i32_2 : i32 to vector<1x384xi32>
    %9 = arith.cmpi slt, %5, %8 : vector<1x384xi32>
    %c0_i32_3 = arith.constant 0 : i32
    %10 = arith.cmpi slt, %3, %c0_i32_3 : i32
    %11 = vector.broadcast %10 : i1 to vector<1x384xi1>
    %12 = vector.broadcast %11 : vector<1x384xi1> to vector<1x384xi1>
    %13 = arith.xori %9, %12 : vector<1x384xi1>
    %14 = arith.andi %13, %7 : vector<1x384xi1>
    %15 = vector.broadcast %3 : i32 to vector<1x384xi32>
    %16 = arith.addi %5, %15 : vector<1x384xi32>
    %17 = arith.select %14, %16, %5 : vector<1x384xi1>, vector<1x384xi32>
    %c0_i32_4 = arith.constant 0 : i32
    %18 = vector.broadcast %c0_i32_4 : i32 to vector<1x384xi32>
    %19 = arith.cmpi eq, %17, %18 : vector<1x384xi32>
    %c1_i32_5 = arith.constant 1 : i32
    %20 = vector.broadcast %c1_i32_5 : i32 to vector<1x384xi32>
    %21 = arith.cmpi eq, %17, %20 : vector<1x384xi32>
    %22 = arith.mulf %0, %0 : vector<1x384xf32>
    %23 = math.exp %0 : vector<1x384xf32>
    %24 = math.sin %0 : vector<1x384xf32>
    %25 = arith.select %21, %23, %24 : vector<1x384xi1>, vector<1x384xf32>
    %26 = arith.select %19, %22, %25 : vector<1x384xi1>, vector<1x384xf32>
    %c0_6 = arith.constant 0 : index
    %c0_7 = arith.constant 0 : index
    %27 = vector.load %arg2[%c0_6, %c0_7] : memref<1x384xf32, #tpu.memory_space<vmem>>, vector<1x384xf32>
    tpu.vector_store %arg2[%c0_6, %c0_7], %26 {strides = array<i32>} : memref<1x384xf32, #tpu.memory_space<vmem>>, vector<1x384xf32>,
    return
  }
  func.func @transform_0(%arg0: i32) -> (i32, i32) {
    %c0_i32 = arith.constant 0 : i32
    %c0_i32_0 = arith.constant 0 : i32
    return %arg0, %c0_i32 : i32, i32
  }
  func.func @transform_1(%arg0: i32) -> (i32, i32) {
    %c0_i32 = arith.constant 0 : i32
    %c0_i32_0 = arith.constant 0 : i32
    return %arg0, %c0_i32 : i32, i32
  }
}

</mosaic_0001>

<bundles_post_ra>
// kernel: tpu_custom_call.1
= control target key start
LH: loop header
LB: loop body
LE: loop exit
PB: predicated region body
PF: predicated region fallthrough
CT: control target
= control target key end

     0   :  { %6 = vsyncpa [#allocation3], 0  ;;  %s451_s0 = inlined_call_operand.hbm [shape: f32[1,384], index: 0, kind: input, shape index: {}]   ;;  %s452_s1 = inlined_call_operand.hbm [shape: f32[1,384], index: 1, kind: output, shape index: {}]  }
   0x1   :  { %7 = vsyncpa [#allocation4], 0  ;;  %s365_s6 = smov [#allocation2]   ;;  %s317_s10 = scalar_lea.hbm %s451_s0, 48 }
   0x2   :  { %s14_s7 = sshll.u32 %s365_s6, 4  ;;  %p318_p0 = scmp.ne.s32.totalorder %s451_s0, %s317_s10  ;;  %s15_s7 = int_to_ptr.vmem [resolvable:$true] %s14_s7 }
   0x3   :  { %p321_p1 = scmp.lt.u32.totalorder %s317_s10, %s451_s0 }
   0x5   :  { %p323_p2 = pnand %p321_p1, %p318_p0 }
   0x7   :  { %326 = shalt.err (!%p323_p2)
}
   0x8   :  { %s327_s15 = scalar_lea.vmem %s15_s7, 48  ;;  %s331_s16 = scalar_lea.vmem %s15_s7, 64 }
   0x9   :  { %p328_p3 = scmp.ne.s32.totalorder %s15_s7, %s327_s15  ;;  %p332_p4 = scmp.lt.s32.totalorder %s15_s7, %s15_s7 }
   0xa   :  { %p333_p5 = scmp.lt.s32.totalorder %s331_s16, %s327_s15 }
   0xc   :  { %p334_p6 = por %p333_p5, %p332_p4 }
   0xe   :  { %p335_p7 = pnand %p334_p6, %p328_p3 }
  0x10   :  { %338 = shalt.err (!%p335_p7)
}
  0x11   :  { %17 = dma.hbm_to_vmem [thread:$0]  %s451_s0, 48, %s15_s7, [#allocation3]  }
  0x12   :  { %361 = dma.done.wait [#allocation3], 48  }
  0x13   :  { %362 = vsyncadd [#allocation3], 4294967248  ;;  %v396_v0 = vld [vmem:[#allocation2] sm:$0x7]  ;;  %v366_v12 = vmov 683565275   ;;  %v22_v59 = vlaneseq }
  0x14   :  { %v86_v1 = vand.u32 2139095040, %v396_v0  ;;  %v83_v3 = vand.u32 2147483647, %v396_v0  ;;  %v367_v14 = vmov 2475754826   ;;  %vm85_vm7 = vcmp.lt.s32.totalorder %v396_v0, 0 }
  0x15   :  { %v368_v16 = vmov 2131351028   ;;  %v369_v18 = vmov 2102212464   ;;  %v370_v20 = vmov 920167782  }
  0x16   :  { %v87_v2 = vshrl.u32 %v86_v1, 23  ;;  %v90_v6 = vand.u32 8388607, %v83_v3  ;;  %v371_v27 = vmov 1326507024   ;;  %v23_v62 = vand.u32 127, %v22_v59 }
  0x17   :  { %vm84_vm8 = vcmp.le.f32.partialorder %v83_v3, 0.7853982  ;;  %v372_v3 = vmov 1966171168   ;;  %s373_s0 = smov [#allocation5]  }
  0x18   :  { %v288_v4 = vadd.s32 4294967169, %v87_v2  ;;  %v91_v9 = vor.u32 8388608, %v90_v6  ;;  %v24_v2 = vadd.s32 128, %v23_v62  ;;  %v25_v6 = vadd.s32 256, %v23_v62  ;;  %s279_s19 = sshll.u32 %s373_s0, 4  ;;  %s280_s19 = int_to_ptr.vmem [resolvable:$true] %s279_s19 }
  0x19   :  { %s339_s20 = scalar_lea.vmem %s280_s19, 48  ;;  %s343_s21 = scalar_lea.vmem %s280_s19, 64 }
  0x1a   :  { %v93_v5 = vadd.s32 1, %v288_v4  ;;  %v131_v29 = vshll.u32 %v91_v9, 8  ;;  %p340_p8 = scmp.ne.s32.totalorder %s280_s19, %s339_s20  ;;  %p344_p9 = scmp.lt.s32.totalorder %s280_s19, %s280_s19 }
  0x1b   :  { %p345_p10 = scmp.lt.s32.totalorder %s343_s21, %s339_s20 }
  0x1c   :  { %vm94_vm0 = vcmp.gt.s32.totalorder %v93_v5, 0 }
  0x1d   :  { %v95_v7 = vsel %vm94_vm0, %v93_v5, 0  ;;  %p346_p11 = por %p345_p10, %p344_p9 }
  0x1e   :  { %v97_v8 = vand.u32 31, %v95_v7  ;;  %v96_v10 = vshrl.u32 %v95_v7, 5 }
  0x1f   :  { %p347_p12 = pnand %p346_p11, %p340_p8 }
  0x20   :  { %v98_v11 = vsub.s32 32, %v97_v8  ;;  %v100_v13 = vshll.u32 %v366_v12, %v97_v8  ;;  %v103_v15 = vshll.u32 %v367_v14, %v97_v8  ;;  %v106_v17 = vshll.u32 %v368_v16, %v97_v8 }
  0x21   :  { %v109_v19 = vshll.u32 %v369_v18, %v97_v8  ;;  %v112_v21 = vshll.u32 %v370_v20, %v97_v8  ;;  %vm115_vm1 = vcmp.lt.s32.totalorder %v96_v10, 1  ;;  %vm118_vm2 = vcmp.lt.s32.totalorder %v96_v10, 4 }
  0x22   :  { %v99_v22 = vshrl.u32 %v366_v12, %v98_v11  ;;  %v101_v23 = vshrl.u32 %v367_v14, %v98_v11  ;;  %v104_v24 = vshrl.u32 %v368_v16, %v98_v11  ;;  %v107_v25 = vshrl.u32 %v369_v18, %v98_v11 }
  0x23   :  { %v110_v26 = vshrl.u32 %v370_v20, %v98_v11  ;;  %v113_v28 = vshrl.u32 %v371_v27, %v98_v11  ;;  %vm116_vm3 = vcmp.lt.s32.totalorder %v96_v10, 2  ;;  %vm117_vm4 = vcmp.lt.s32.totalorder %v96_v10, 3 }
  0x24   :  { %v102_v30 = vor.u32 %v101_v23, %v100_v13  ;;  %v105_v31 = vor.u32 %v104_v24, %v103_v15  ;;  %v108_v32 = vor.u32 %v107_v25, %v106_v17 }
  0x25   :  { %v111_v33 = vor.u32 %v110_v26, %v109_v19  ;;  %v114_v34 = vor.u32 %v113_v28, %v112_v21  ;;  %v413_v7 = vmul.u32.u64.low 2863311531, %v23_v62  ;;  %v414_v8 = vmul.u32.u64.high 2863311531, %v23_v62, %v413_v7 }
  0x26   :  { %v119_v35 = vsel %vm115_vm1, %v99_v22, %v102_v30  ;;  %v120_v36 = vsel %vm118_vm2, %v108_v32, 2102212464  ;;  %v123_v37 = vsel %vm115_vm1, %v102_v30, %v105_v31  ;;  %v127_v38 = vsel %vm115_vm1, %v105_v31, %v108_v32 }
  0x27   :  { %v121_v39 = vsel %vm117_vm4, %v105_v31, %v120_v36  ;;  %v124_v40 = vsel %vm118_vm2, %v111_v33, 920167782  ;;  %v128_v41 = vsel %vm118_vm2, %v114_v34, 1326507024  ;;  %v32_v23 = vshrl.u32 %v414_v8, 1 }
  0x28   :  { %v125_v42 = vsel %vm117_vm4, %v108_v32, %v124_v40  ;;  %v129_v43 = vsel %vm117_vm4, %v111_v33, %v128_v41  ;;  %v122_v44 = vsel %vm116_vm3, %v119_v35, %v121_v39  ;;  %v81_v32 = vmul.f32 1.442695, %v396_v0 }
  0x29   :  { %v126_v45 = vsel %vm116_vm3, %v123_v37, %v125_v42  ;;  %v130_v46 = vsel %vm116_vm3, %v127_v38, %v129_v43  ;;  %v138_v51 = vmul.u32 %v131_v29, %v122_v44  ;;  %v246_v41 = vunpack.c.l.s4 %v372_v3 }
  0x2a   :  { %v402_v47 = vmul.u32.u64.low %v131_v29, %v130_v46  ;;  %v403_v48 = vmul.u32.u64.high %v131_v29, %v130_v46, %v402_v47  ;;  %v405_v49 = vmul.u32.u64.low %v131_v29, %v126_v45  ;;  %v406_v50 = vmul.u32.u64.high %v131_v29, %v126_v45, %v405_v49 }
  0x2b   :  { %v416_v12 = vmul.u32.u64.low 2863311531, %v24_v2  ;;  %v417_v13 = vmul.u32.u64.high 2863311531, %v24_v2, %v416_v12  ;;  %v419_v16 = vmul.u32.u64.low 2863311531, %v25_v6  ;;  %v420_v17 = vmul.u32.u64.high 2863311531, %v25_v6, %v419_v16 }
  0x2c   :  { %vm140_vm5 = vc.u32 %v403_v48, %v405_v49  ;;  %v141_v52 = vadd.s32 1, %v406_v50  ;;  %v139_v4 = vadd.s32 %v405_v49, %v403_v48  ;;  %v33_v29 = vmul.u32 3, %v32_v23 }
  0x2d   :  { %v43_v25 = vshrl.u32 %v417_v13, 1  ;;  %v54_v27 = vshrl.u32 %v420_v17, 1  ;;  %v189_v42 = vshrl.u32 %v22_v59, 7  ;;  %v247_v46 = vunpack.c.0.s8 %v246_v41 }
  0x2e   :  { %v142_v53 = vsel %vm140_vm5, %v141_v52, %v406_v50  ;;  %v34_v37 = vsub.s32 %v23_v62, %v33_v29  ;;  %v80_v48 = vmul.f32 %v396_v0, %v396_v0  ;;  %vm175_vm4 = vweird.f32 %v396_v0 }
  0x2f   :  { %v143_v54 = vadd.s32 %v142_v53, %v138_v51  ;;  %v44_v31 = vmul.u32 3, %v43_v25  ;;  %v55_v35 = vmul.u32 3, %v54_v27  ;;  %v190_v49 = vsub.s32 0, %v189_v42 }
  0x30   :  { %vm59_vm9 = vcmp.ne.s32.totalorder %v34_v37, 0  ;;  %vm62_vm10 = vcmp.lt.s32.totalorder %v34_v37, 0  ;;  %v68_v44 = vadd.s32 3, %v34_v37  ;;  %v194_v50 = vsub.s32 1, %v189_v42 }
  0x31   :  { %v144_v55 = vadd.s32 536870912, %v143_v54  ;;  %v45_v38 = vsub.s32 %v24_v2, %v44_v31  ;;  %v56_v40 = vsub.s32 %v25_v6, %v55_v35  ;;  %vm65_vm15 = vmand %vm62_vm10, %vm59_vm9  ;;  %v198_v52 = vsub.s32 2, %v189_v42 }
  0x33   :  { %v145_v56 = vshrl.u32 %v144_v55, 30  ;;  %vm60_vm11 = vcmp.ne.s32.totalorder %v45_v38, 0  ;;  %vm63_vm12 = vcmp.lt.s32.totalorder %v45_v38, 0  ;;  %vm61_vm13 = vcmp.ne.s32.totalorder %v56_v40, 0 }
  0x34   :  { %vm64_vm14 = vcmp.lt.s32.totalorder %v56_v40, 0  ;;  %v69_v45 = vadd.s32 3, %v45_v38  ;;  %vm66_vm0 = vmand %vm63_vm12, %vm60_vm11  ;;  %v70_v47 = vadd.s32 3, %v56_v40  ;;  %vm270_vm12 = vcmp.lt.s32.totalorder %v22_v59, 384 }
  0x35   :  { %v146_v57 = vshll.u32 %v145_v56, 30  ;;  %v169_v24 = vsub.s32 4, %v145_v56  ;;  %vm67_vm1 = vmand %vm64_vm14, %vm61_vm13 }
  0x36   :  { %v72_v55 = vsel %vm66_vm0, %v69_v45, %v45_v38 }
  0x37   :  { %v147_v58 = vsub.s32 %v143_v54, %v146_v57  ;;  %v170_v30 = vsel %vm85_vm7, %v169_v24, %v145_v56  ;;  %v71_v54 = vsel %vm65_vm15, %v68_v44, %v34_v37  ;;  %vm78_vm9 = vcmp.eq.s32.totalorder %v72_v55, 1 }
  0x38   :  { %v172_v36 = vsel %vm84_vm8, 0, %v170_v30 }
  0x39   :  { %v149_v60 = vsub.s32 0, %v147_v58  ;;  %v176_v39 = vadd.s32 3, %v172_v36 }
  0x3b   :  { %v289_v61 = vmin.u32 %v149_v60, %v147_v58  ;;  %v177_v43 = vand.u32 3, %v176_v39  ;;  %v250_v60 = vsub.s32 %v247_v46, %v189_v42 }
  0x3d   :  { %v151_v63 = vclz %v289_v61  ;;  %vm182_vm2 = vcmp.eq.s32.totalorder %v177_v43, 2  ;;  %vm179_vm3 = vcmp.eq.s32.totalorder %v177_v43, 0  ;;  %vm178_vm5 = vcmp.lt.s32.totalorder %v177_v43, 2 }
  0x3e   :  { %v73_v61 = vsel %vm67_vm1, %v70_v47, %v56_v40 }
  0x3f   :  { %v290_v1 = vadd.s32 4294967294, %v151_v63  ;;  %v226_v63 = vrot.slane %v80_v48, %v190_v49  ;;  %vm79_vm10 = vcmp.eq.s32.totalorder %v73_v61, 1  ;;  %vm76_vm11 = vcmp.eq.s32.totalorder %v73_v61, 0 }
  0x41   :  { %vm291_vm6 = vcmp.lt.s32.totalorder %v290_v1, 0 }
  0x42   :  { %v154_v5 = vsel %vm291_vm6, 0, %v290_v1  ;;  %v230_v1 = vrot.slane %v80_v48, %v194_v50  ;;  %vm74_vm6 = vcmp.eq.s32.totalorder %v71_v54, 0 }
  0x43   :  { %v155_v9 = vsub.s32 32, %v154_v5  ;;  %v156_v10 = vshll.u32 %v147_v58, %v154_v5  ;;  %v159_v11 = vsub.s32 4294967266, %v154_v5 }
  0x45   :  { %v157_v14 = vshrl.u32 %v139_v4, %v155_v9  ;;  %v160_v15 = vadd.s32 127, %v159_v11  ;;  %v234_v4 = vrot.slane %v80_v48, %v198_v52 }
  0x47   :  { %v158_v18 = vor.u32 %v157_v14, %v156_v10  ;;  %v161_v19 = vshll.u32 %v160_v15, 23 }
  0x49   :  { %v162_v20 = vor.u32 4788187, %v161_v19  ;;  %v165_v21 = vcvt.s32.f32 %v158_v18 }
  0x4b   :  { %v163_v22 = vand.u32 2147483647, %v162_v20 }
  0x4d   :  { %v166_v26 = vmul.f32 %v165_v21, %v163_v22 }
  0x4f   :  { %v167_v28 = vxor.u32 2147483648, %v166_v26 }
  0x51   :  { %v168_v33 = vsel %vm85_vm7, %v167_v28, %v166_v26  ;;  %vm75_vm7 = vcmp.eq.s32.totalorder %v72_v55, 0 }
  0x52   :  { %v171_v34 = vsel %vm84_vm8, %v396_v0, %v168_v33  ;;  %vm77_vm8 = vcmp.eq.s32.totalorder %v71_v54, 1 }
  0x53   :  { %311 = vcosq.f32 %v171_v34 }
  0x54   :  { %313 = vsinq.f32 %v171_v34 }
  0x55   :  { %315 = vpow2.f32 %v81_v32 }
  0x5d   :  { %v312_v51 = vpop.eup %311 }
  0x5e   :  { %v314_v53 = vpop.eup %313  ;;  %v183_v56 = vxor.u32 2147483648, %v312_v51 }
  0x5f   :  { %v316_v57 = vpop.eup %315  ;;  %v180_v58 = vxor.u32 2147483648, %v314_v53 }
  0x60   :  { %v184_v62 = vsel %vm182_vm2, %v183_v56, %v314_v53  ;;  %v191_v6 = vrot.slane %v316_v57, %v190_v49  ;;  %v195_v7 = vrot.slane %v316_v57, %v194_v50  ;;  %v199_v8 = vrot.slane %v316_v57, %v198_v52 }
  0x61   :  { %v181_v2 = vsel %vm179_vm3, %v312_v51, %v180_v58 }
  0x62   :  { %v185_v5 = vsel %vm178_vm5, %v181_v2, %v184_v62 }
  0x63   :  { %v186_v9 = vsel %vm175_vm4, nan, %v185_v5 }
  0x64   :  { %v207_v10 = vrot.slane %v186_v9, %v190_v49  ;;  %v211_v11 = vrot.slane %v186_v9, %v194_v50  ;;  %v215_v12 = vrot.slane %v186_v9, %v198_v52 }
  0x66   :  { %v219_v13 = vsel %vm77_vm8, %v191_v6, %v207_v10  ;;  %v220_v14 = vsel %vm78_vm9, %v195_v7, %v211_v11  ;;  %v221_v15 = vsel %vm79_vm10, %v199_v8, %v215_v12 }
  0x67   :  { %v238_v16 = vsel %vm74_vm6, %v226_v63, %v219_v13  ;;  %v239_v17 = vsel %vm75_vm7, %v230_v1, %v220_v14  ;;  %v240_v18 = vsel %vm76_vm11, %v234_v4, %v221_v15 }
  0x68   :  { %v244_v19 = vcombine.low %v238_v16, %v239_v17  ;;  %v258_v20 = vrot.slane %v240_v18, %v250_v60 }
  0x6a   :  { %v251_v21 = vrot.slane %v244_v19, %v250_v60 }
  0x6c   :  { %v259_v22 = vcombine.low %v251_v21, %v258_v20 }
  0x6e   :  { %v266_v0 = vrot.slane %v259_v22, %v250_v60 }
  0x70   :  { %272 = vst.msk [vmem:[#allocation5] sm:$0x7] %vm270_vm12, %v266_v0 }
  0x71   :  { %350 = shalt.err (!%p347_p12)
}
  0x72   :  { %s351_s24 = scalar_lea.hbm %s452_s1, 48 }
  0x73   :  { %p352_p13 = scmp.ne.s32.totalorder %s452_s1, %s351_s24  ;;  %p355_p0 = scmp.lt.u32.totalorder %s351_s24, %s452_s1 }
  0x75   :  { %p357_p1 = pnand %p355_p0, %p352_p13 }
  0x77   :  { %360 = shalt.err (!%p357_p1)
}
  0x78   :  { %282 = dma.vmem_to_hbm [thread:$0]  %s280_s19, 48, %s452_s1, [#allocation4]  }
  0x79   :  { %363 = dma.done.wait [#allocation4], 48  }
  0x7a   :  { %364 = vsyncadd [#allocation4], 4294967248 }
  0x7b   :  { %286 = vsyncpa [#allocation3], 1 }
  0x7c   :  { %287 = vsyncpa [#allocation4], 1 }

</bundles_post_ra>
